<compile_context>
chip_gen: v7x
topology: tpu7x:2x2x1
jax: 0.10.0
libtpu: 0.0.40
codegen_flags: <defaults>
</compile_context>

<pallas_src>
import jax
import jax.numpy as jnp
from jax.experimental import pallas as pl
from jax.experimental.pallas import tpu as pltpu

# Class weights from the reference module (C = 4), baked in as static constants.
_W = (0.011328939365293219, 0.4646857304592822,
      0.13541345968711663, 0.3885718704883079)
DICE_SMOOTH = 0.001
_LANES = 128
_MAX_TILE_ROWS = 512     # ~1 MiB / input / grid step at f32 with C=4
_PRED_PAD = -1.0e4       # sigmoid(pad)=0 exactly; paired with true-pad=0 -> zero contribution


def _cdiv(a, b):
    return -(-a // b)


def _round_up(x, m):
    return ((x + m - 1) // m) * m


def _dice_ce_tile_kernel(pred_ref, true_ref, out_ref, acc_inter, acc_denom, acc_ce):
    """One (C=4, TILE_ROWS, 128) spatial tile of one (image, core-split) pair.

    pred_ref/true_ref : (4, TILE_ROWS, 128) lane/sublane-dense channel planes.
    out_ref           : (8, 128) lane-padded partials; row 0, lanes 0..2 hold
                        [intersection, sum(sigmoid)+sum(true), ce_sum].
    acc_*             : (TILE_ROWS, 128) f32 VMEM accumulators -- elementwise
                        VPU adds per step; one XLU reduction in the epilogue.
    """
    t = pl.program_id(2)

    @pl.when(t == 0)
    def _init():
        acc_inter[...] = jnp.zeros_like(acc_inter)
        acc_denom[...] = jnp.zeros_like(acc_denom)
        acc_ce[...] = jnp.zeros_like(acc_ce)

    # Channel-unrolled loads: four lane/sublane-dense (rows, 128) planes.
    p0 = pred_ref[0].astype(jnp.float32)
    p1 = pred_ref[1].astype(jnp.float32)
    p2 = pred_ref[2].astype(jnp.float32)
    p3 = pred_ref[3].astype(jnp.float32)
    t0 = true_ref[0].astype(jnp.float32)
    t1 = true_ref[1].astype(jnp.float32)
    t2 = true_ref[2].astype(jnp.float32)
    t3 = true_ref[3].astype(jnp.float32)

    # ---- dice partials ----
    # NOTE: jax.nn.sigmoid kept as-is. Reusing exp(z_c) from the log-softmax
    # below (sigmoid = e_c / (e_c + exp(-m))) only helps if sigmoid lowers to
    # exp+recip (verify via bundle dump) and requires clamping m for |m|>~88.
    s0 = jax.nn.sigmoid(p0)
    s1 = jax.nn.sigmoid(p1)
    s2 = jax.nn.sigmoid(p2)
    s3 = jax.nn.sigmoid(p3)
    acc_inter[...] += s0 * t0 + s1 * t1 + s2 * t2 + s3 * t3
    # Dice only needs sum(sigmoid) + sum(true): single merged accumulator.
    acc_denom[...] += (s0 + s1 + s2 + s3) + (t0 + t1 + t2 + t3)

    # ---- weighted CE with probability targets: channel-unrolled log-softmax ----
    m = jnp.maximum(jnp.maximum(p0, p1), jnp.maximum(p2, p3))
    z0 = p0 - m
    z1 = p1 - m
    z2 = p2 - m
    z3 = p3 - m
    lse = jnp.log(jnp.exp(z0) + jnp.exp(z1) + jnp.exp(z2) + jnp.exp(z3))
    # w_c * t_c computed once per channel (factored per review).
    wt0 = _W[0] * t0
    wt1 = _W[1] * t1
    wt2 = _W[2] * t2
    wt3 = _W[3] * t3
    acc_ce[...] += ((wt0 + wt1 + wt2 + wt3) * lse
                    - (wt0 * z0 + wt1 * z1 + wt2 * z2 + wt3 * z3))

    @pl.when(t == pl.num_programs(2) - 1)
    def _finalize():
        inter = jnp.sum(acc_inter[...])
        denom = jnp.sum(acc_denom[...])
        ce = jnp.sum(acc_ce[...])
        lane = jax.lax.broadcasted_iota(jnp.int32, out_ref.shape, 1)
        vals = jnp.where(lane == 0, inter,
               jnp.where(lane == 1, denom,
               jnp.where(lane == 2, ce, 0.0)))
        out_ref[...] = vals  # one unmasked lane-dense vector store


def dice_loss_pallas(y_pred, y_true):
    """y_pred, y_true: (N, C, H, W); y_true holds class probabilities (soft targets)."""
    n, c, h, w = y_pred.shape
    assert y_true.shape == y_pred.shape
    assert c == len(_W), f"kernel specialized for C={len(_W)} classes"
    hw = h * w

    r0 = _cdiv(hw, _LANES)                        # spatial rows of 128 lanes
    # Give v7x's second TensorCore work when the batch axis can't (N == 1).
    split = 2 if (n == 1 and r0 >= 16) else 1
    n_tiles = max(1, _cdiv(r0, _MAX_TILE_ROWS))
    n_tiles = _round_up(n_tiles, split)
    tr = _round_up(_cdiv(r0, n_tiles), 8)         # sublane tile, multiple of 8
    r_pad = n_tiles * tr
    hw_pad = r_pad * _LANES
    tiles_per_split = n_tiles // split

    # Free, layout-preserving reshape (no transpose): NCHW -> (N, C, rows, 128).
    pred_flat = y_pred.reshape(n, c, hw)
    true_flat = y_true.reshape(n, c, hw)
    if hw_pad != hw:
        # TODO(synk): in-kernel row/lane masking of the last tile would avoid this
        # extra HBM pass; pad values are chosen so padded positions contribute
        # exactly 0 to every partial sum.
        pad = ((0, 0), (0, 0), (0, hw_pad - hw))
        pred_flat = jnp.pad(pred_flat, pad, constant_values=_PRED_PAD)
        true_flat = jnp.pad(true_flat, pad, constant_values=0.0)
    pred4 = pred_flat.reshape(n, c, r_pad, _LANES)
    true4 = true_flat.reshape(n, c, r_pad, _LANES)

    in_map = lambda i, s, t: (i, 0, s * tiles_per_split + t, 0)
    partials = pl.pallas_call(
        _dice_ce_tile_kernel,
        out_shape=jax.ShapeDtypeStruct((n, split, 8, _LANES), jnp.float32),
        grid=(n, split, tiles_per_split),
        in_specs=[
            pl.BlockSpec((None, c, tr, _LANES), in_map),
            pl.BlockSpec((None, c, tr, _LANES), in_map),
        ],
        out_specs=pl.BlockSpec((None, None, 8, _LANES), lambda i, s, t: (i, s, 0, 0)),
        scratch_shapes=[
            pltpu.VMEM((tr, _LANES), jnp.float32),
            pltpu.VMEM((tr, _LANES), jnp.float32),
            pltpu.VMEM((tr, _LANES), jnp.float32),
        ],
        compiler_params=pltpu.CompilerParams(
            dimension_semantics=("parallel", "parallel", "arbitrary"),
            vmem_limit_bytes=32 * 1024 * 1024,
        ),
    )(pred4, true4)

    # Tiny scalar epilogue on the per-(image, split) partials.
    inter = jnp.sum(partials[:, :, 0, 0])
    denom = jnp.sum(partials[:, :, 0, 1])
    ce_sum = jnp.sum(partials[:, :, 0, 2])
    dice = (2.0 * inter + DICE_SMOOTH) / (denom + DICE_SMOOTH)
    # Mean over N*H*W positions matches PyTorch CrossEntropyLoss with probability
    # (soft) targets; class-index-target mode (normalize by sum of selected class
    # weights) is intentionally not implemented.
    ce_loss = ce_sum / float(n * hw)
    return (1.0 - dice) + ce_loss


def _reference(y_pred, y_true):
    # Pure-JAX reference mirroring the PyTorch forward (soft-target CE).
    sig = jax.nn.sigmoid(y_pred).reshape(-1)
    yt = y_true.reshape(-1)
    inter = jnp.sum(sig * yt)
    dice = (2.0 * inter + DICE_SMOOTH) / (jnp.sum(sig) + jnp.sum(yt) + DICE_SMOOTH)
    logp = jax.nn.log_softmax(y_pred, axis=1)
    wts = jnp.array(_W, dtype=jnp.float32).reshape(1, -1, 1, 1)
    ce = jnp.mean(-jnp.sum(wts * y_true * logp, axis=1))
    return (1.0 - dice) + ce


if __name__ == "__main__":
    key = jax.random.PRNGKey(0)
    k1, k2 = jax.random.split(key)
    N, C, H, W = 2, 4, 16, 16
    y_pred = jax.random.normal(k1, (N, C, H, W), dtype=jnp.float32)
    # Probability targets (one-hot over C classes), matching CE soft-target mode.
    cls = jax.random.randint(k2, (N, H, W), 0, C)
    y_true = jnp.transpose(jax.nn.one_hot(cls, C, dtype=jnp.float32), (0, 3, 1, 2))

    loss = dice_loss_pallas(y_pred, y_true)
    jax.block_until_ready(loss)

    ref = _reference(y_pred, y_true)
    assert jnp.allclose(loss, ref, rtol=1e-4, atol=1e-5), (loss, ref)
    print("KERNEL_OK")
</pallas_src>

<mosaic_0001>
module attributes {stable_mosaic.version = 11 : i64} {
  func.func @_dice_ce_tile_kernel(%arg0: i32, %arg1: i32, %arg2: i32, %arg3: memref<1x4x8x128xf32, #tpu.memory_space<vmem>>, %arg4: memref<1x4x8x128xf32, #tpu.memory_space<vmem>>, %arg5: memref<1x1x8x128xf32, #tpu.memory_space<vmem>>, %arg6: memref<8x128xf32, #tpu.memory_space<vmem>>, %arg7: memref<8x128xf32, #tpu.memory_space<vmem>>, %arg8: memref<8x128xf32, #tpu.memory_space<vmem>>) attributes {dimension_semantics = [#tpu.dimension_semantics<parallel>, #tpu.dimension_semantics<parallel>, #tpu.dimension_semantics<arbitrary>], iteration_bounds = array<i64: 2, 1, 1>, scalar_prefetch = 0 : i64, scratch_operands = 3 : i64, tpu.core_type = #tpu.core_type<tc>, window_params = [{transform_indices = @transform_0, window_bounds = array<i64: 1, 4, 8, 128>}, {transform_indices = @transform_1, window_bounds = array<i64: 1, 4, 8, 128>}, {transform_indices = @transform_2, window_bounds = array<i64: 1, 1, 8, 128>}]} {
    %c0_i32 = arith.constant 0 : i32
    %0 = arith.cmpi eq, %arg2, %c0_i32 : i32
    %1 = arith.extui %0 : i1 to i32
    %c0_i32_0 = arith.constant 0 : i32
    %2 = arith.cmpi ne, %1, %c0_i32_0 : i32
    scf.if %2 {
      %cst_50 = arith.constant 0.000000e+00 : f32
      %100 = vector.broadcast %cst_50 : f32 to vector<8x128xf32>
      %c0_51 = arith.constant 0 : index
      %c0_52 = arith.constant 0 : index
      %101 = vector.load %arg6[%c0_51, %c0_52] : memref<8x128xf32, #tpu.memory_space<vmem>>, vector<8x128xf32>
      tpu.vector_store %arg6[%c0_51, %c0_52], %100 {strides = array<i32>} : memref<8x128xf32, #tpu.memory_space<vmem>>, vector<8x128xf32>,
      %cst_53 = arith.constant 0.000000e+00 : f32
      %102 = vector.broadcast %cst_53 : f32 to vector<8x128xf32>
      %c0_54 = arith.constant 0 : index
      %c0_55 = arith.constant 0 : index
      %103 = vector.load %arg7[%c0_54, %c0_55] : memref<8x128xf32, #tpu.memory_space<vmem>>, vector<8x128xf32>
      tpu.vector_store %arg7[%c0_54, %c0_55], %102 {strides = array<i32>} : memref<8x128xf32, #tpu.memory_space<vmem>>, vector<8x128xf32>,
      %cst_56 = arith.constant 0.000000e+00 : f32
      %104 = vector.broadcast %cst_56 : f32 to vector<8x128xf32>
      %c0_57 = arith.constant 0 : index
      %c0_58 = arith.constant 0 : index
      %105 = vector.load %arg8[%c0_57, %c0_58] : memref<8x128xf32, #tpu.memory_space<vmem>>, vector<8x128xf32>
      tpu.vector_store %arg8[%c0_57, %c0_58], %104 {strides = array<i32>} : memref<8x128xf32, #tpu.memory_space<vmem>>, vector<8x128xf32>,
    } else {
    }
    %c0 = arith.constant 0 : index
    %c0_1 = arith.constant 0 : index
    %c0_2 = arith.constant 0 : index
    %c0_3 = arith.constant 0 : index
    %3 = vector.load %arg3[%c0, %c0_1, %c0_2, %c0_3] : memref<1x4x8x128xf32, #tpu.memory_space<vmem>>, vector<1x1x8x128xf32>
    %4 = vector.shape_cast %3 : vector<1x1x8x128xf32> to vector<8x128xf32>
    %c0_4 = arith.constant 0 : index
    %c1 = arith.constant 1 : index
    %c0_5 = arith.constant 0 : index
    %c0_6 = arith.constant 0 : index
    %5 = vector.load %arg3[%c0_4, %c1, %c0_5, %c0_6] : memref<1x4x8x128xf32, #tpu.memory_space<vmem>>, vector<1x1x8x128xf32>
    %6 = vector.shape_cast %5 : vector<1x1x8x128xf32> to vector<8x128xf32>
    %c0_7 = arith.constant 0 : index
    %c2 = arith.constant 2 : index
    %c0_8 = arith.constant 0 : index
    %c0_9 = arith.constant 0 : index
    %7 = vector.load %arg3[%c0_7, %c2, %c0_8, %c0_9] : memref<1x4x8x128xf32, #tpu.memory_space<vmem>>, vector<1x1x8x128xf32>
    %8 = vector.shape_cast %7 : vector<1x1x8x128xf32> to vector<8x128xf32>
    %c0_10 = arith.constant 0 : index
    %c3 = arith.constant 3 : index
    %c0_11 = arith.constant 0 : index
    %c0_12 = arith.constant 0 : index
    %9 = vector.load %arg3[%c0_10, %c3, %c0_11, %c0_12] : memref<1x4x8x128xf32, #tpu.memory_space<vmem>>, vector<1x1x8x128xf32>
    %10 = vector.shape_cast %9 : vector<1x1x8x128xf32> to vector<8x128xf32>
    %c0_13 = arith.constant 0 : index
    %c0_14 = arith.constant 0 : index
    %c0_15 = arith.constant 0 : index
    %c0_16 = arith.constant 0 : index
    %11 = vector.load %arg4[%c0_13, %c0_14, %c0_15, %c0_16] : memref<1x4x8x128xf32, #tpu.memory_space<vmem>>, vector<1x1x8x128xf32>
    %12 = vector.shape_cast %11 : vector<1x1x8x128xf32> to vector<8x128xf32>
    %c0_17 = arith.constant 0 : index
    %c1_18 = arith.constant 1 : index
    %c0_19 = arith.constant 0 : index
    %c0_20 = arith.constant 0 : index
    %13 = vector.load %arg4[%c0_17, %c1_18, %c0_19, %c0_20] : memref<1x4x8x128xf32, #tpu.memory_space<vmem>>, vector<1x1x8x128xf32>
    %14 = vector.shape_cast %13 : vector<1x1x8x128xf32> to vector<8x128xf32>
    %c0_21 = arith.constant 0 : index
    %c2_22 = arith.constant 2 : index
    %c0_23 = arith.constant 0 : index
    %c0_24 = arith.constant 0 : index
    %15 = vector.load %arg4[%c0_21, %c2_22, %c0_23, %c0_24] : memref<1x4x8x128xf32, #tpu.memory_space<vmem>>, vector<1x1x8x128xf32>
    %16 = vector.shape_cast %15 : vector<1x1x8x128xf32> to vector<8x128xf32>
    %c0_25 = arith.constant 0 : index
    %c3_26 = arith.constant 3 : index
    %c0_27 = arith.constant 0 : index
    %c0_28 = arith.constant 0 : index
    %17 = vector.load %arg4[%c0_25, %c3_26, %c0_27, %c0_28] : memref<1x4x8x128xf32, #tpu.memory_space<vmem>>, vector<1x1x8x128xf32>
    %18 = vector.shape_cast %17 : vector<1x1x8x128xf32> to vector<8x128xf32>
    %19 = arith.negf %4 : vector<8x128xf32>
    %20 = math.exp %19 : vector<8x128xf32>
    %cst = arith.constant 1.000000e+00 : f32
    %21 = vector.broadcast %cst : f32 to vector<8x128xf32>
    %22 = arith.addf %21, %20 : vector<8x128xf32>
    %23 = arith.divf %21, %22 : vector<8x128xf32>
    %24 = arith.negf %6 : vector<8x128xf32>
    %25 = math.exp %24 : vector<8x128xf32>
    %cst_29 = arith.constant 1.000000e+00 : f32
    %26 = vector.broadcast %cst_29 : f32 to vector<8x128xf32>
    %27 = arith.addf %26, %25 : vector<8x128xf32>
    %28 = arith.divf %26, %27 : vector<8x128xf32>
    %29 = arith.negf %8 : vector<8x128xf32>
    %30 = math.exp %29 : vector<8x128xf32>
    %cst_30 = arith.constant 1.000000e+00 : f32
    %31 = vector.broadcast %cst_30 : f32 to vector<8x128xf32>
    %32 = arith.addf %31, %30 : vector<8x128xf32>
    %33 = arith.divf %31, %32 : vector<8x128xf32>
    %34 = arith.negf %10 : vector<8x128xf32>
    %35 = math.exp %34 : vector<8x128xf32>
    %cst_31 = arith.constant 1.000000e+00 : f32
    %36 = vector.broadcast %cst_31 : f32 to vector<8x128xf32>
    %37 = arith.addf %36, %35 : vector<8x128xf32>
    %38 = arith.divf %36, %37 : vector<8x128xf32>
    %c0_32 = arith.constant 0 : index
    %c0_33 = arith.constant 0 : index
    %39 = vector.load %arg6[%c0_32, %c0_33] : memref<8x128xf32, #tpu.memory_space<vmem>>, vector<8x128xf32>
    %40 = arith.mulf %23, %12 : vector<8x128xf32>
    %41 = arith.mulf %28, %14 : vector<8x128xf32>
    %42 = arith.addf %40, %41 : vector<8x128xf32>
    %43 = arith.mulf %33, %16 : vector<8x128xf32>
    %44 = arith.addf %42, %43 : vector<8x128xf32>
    %45 = arith.mulf %38, %18 : vector<8x128xf32>
    %46 = arith.addf %44, %45 : vector<8x128xf32>
    %47 = arith.addf %39, %46 : vector<8x128xf32>
    %c0_34 = arith.constant 0 : index
    %c0_35 = arith.constant 0 : index
    %48 = vector.load %arg6[%c0_34, %c0_35] : memref<8x128xf32, #tpu.memory_space<vmem>>, vector<8x128xf32>
    tpu.vector_store %arg6[%c0_34, %c0_35], %47 {strides = array<i32>} : memref<8x128xf32, #tpu.memory_space<vmem>>, vector<8x128xf32>,
    %c0_36 = arith.constant 0 : index
    %c0_37 = arith.constant 0 : index
    %49 = vector.load %arg7[%c0_36, %c0_37] : memref<8x128xf32, #tpu.memory_space<vmem>>, vector<8x128xf32>
    %50 = arith.addf %23, %28 : vector<8x128xf32>
    %51 = arith.addf %50, %33 : vector<8x128xf32>
    %52 = arith.addf %51, %38 : vector<8x128xf32>
    %53 = arith.addf %12, %14 : vector<8x128xf32>
    %54 = arith.addf %53, %16 : vector<8x128xf32>
    %55 = arith.addf %54, %18 : vector<8x128xf32>
    %56 = arith.addf %52, %55 : vector<8x128xf32>
    %57 = arith.addf %49, %56 : vector<8x128xf32>
    %c0_38 = arith.constant 0 : index
    %c0_39 = arith.constant 0 : index
    %58 = vector.load %arg7[%c0_38, %c0_39] : memref<8x128xf32, #tpu.memory_space<vmem>>, vector<8x128xf32>
    tpu.vector_store %arg7[%c0_38, %c0_39], %57 {strides = array<i32>} : memref<8x128xf32, #tpu.memory_space<vmem>>, vector<8x128xf32>,
    %59 = arith.maximumf %4, %6 : vector<8x128xf32>
    %60 = arith.maximumf %8, %10 : vector<8x128xf32>
    %61 = arith.maximumf %59, %60 : vector<8x128xf32>
    %62 = arith.subf %4, %61 : vector<8x128xf32>
    %63 = arith.subf %6, %61 : vector<8x128xf32>
    %64 = arith.subf %8, %61 : vector<8x128xf32>
    %65 = arith.subf %10, %61 : vector<8x128xf32>
    %66 = math.exp %62 : vector<8x128xf32>
    %67 = math.exp %63 : vector<8x128xf32>
    %68 = arith.addf %66, %67 : vector<8x128xf32>
    %69 = math.exp %64 : vector<8x128xf32>
    %70 = arith.addf %68, %69 : vector<8x128xf32>
    %71 = math.exp %65 : vector<8x128xf32>
    %72 = arith.addf %70, %71 : vector<8x128xf32>
    %73 = math.log %72 : vector<8x128xf32>
    %cst_40 = arith.constant 0.0113289393 : f32
    %74 = vector.broadcast %cst_40 : f32 to vector<8x128xf32>
    %75 = arith.mulf %74, %12 : vector<8x128xf32>
    %cst_41 = arith.constant 0.464685738 : f32
    %76 = vector.broadcast %cst_41 : f32 to vector<8x128xf32>
    %77 = arith.mulf %76, %14 : vector<8x128xf32>
    %cst_42 = arith.constant 0.135413453 : f32
    %78 = vector.broadcast %cst_42 : f32 to vector<8x128xf32>
    %79 = arith.mulf %78, %16 : vector<8x128xf32>
    %cst_43 = arith.constant 0.388571858 : f32
    %80 = vector.broadcast %cst_43 : f32 to vector<8x128xf32>
    %81 = arith.mulf %80, %18 : vector<8x128xf32>
    %c0_44 = arith.constant 0 : index
    %c0_45 = arith.constant 0 : index
    %82 = vector.load %arg8[%c0_44, %c0_45] : memref<8x128xf32, #tpu.memory_space<vmem>>, vector<8x128xf32>
    %83 = arith.addf %75, %77 : vector<8x128xf32>
    %84 = arith.addf %83, %79 : vector<8x128xf32>
    %85 = arith.addf %84, %81 : vector<8x128xf32>
    %86 = arith.mulf %85, %73 : vector<8x128xf32>
    %87 = arith.mulf %75, %62 : vector<8x128xf32>
    %88 = arith.mulf %77, %63 : vector<8x128xf32>
    %89 = arith.addf %87, %88 : vector<8x128xf32>
    %90 = arith.mulf %79, %64 : vector<8x128xf32>
    %91 = arith.addf %89, %90 : vector<8x128xf32>
    %92 = arith.mulf %81, %65 : vector<8x128xf32>
    %93 = arith.addf %91, %92 : vector<8x128xf32>
    %94 = arith.subf %86, %93 : vector<8x128xf32>
    %95 = arith.addf %82, %94 : vector<8x128xf32>
    %c0_46 = arith.constant 0 : index
    %c0_47 = arith.constant 0 : index
    %96 = vector.load %arg8[%c0_46, %c0_47] : memref<8x128xf32, #tpu.memory_space<vmem>>, vector<8x128xf32>
    tpu.vector_store %arg8[%c0_46, %c0_47], %95 {strides = array<i32>} : memref<8x128xf32, #tpu.memory_space<vmem>>, vector<8x128xf32>,
    %c0_i32_48 = arith.constant 0 : i32
    %97 = arith.cmpi eq, %arg2, %c0_i32_48 : i32
    %98 = arith.extui %97 : i1 to i32
    %c0_i32_49 = arith.constant 0 : i32
    %99 = arith.cmpi ne, %98, %c0_i32_49 : i32
    scf.if %99 {
      %c0_50 = arith.constant 0 : index
      %c0_51 = arith.constant 0 : index
      %100 = vector.load %arg6[%c0_50, %c0_51] : memref<8x128xf32, #tpu.memory_space<vmem>>, vector<8x128xf32>
      %101 = vector.shape_cast %100 : vector<8x128xf32> to vector<1x8x128xf32>
      %cst_52 = arith.constant dense<0.000000e+00> : vector<1xf32>
      %102 = vector.multi_reduction <add>, %101, %cst_52 [1, 2] : vector<1x8x128xf32> to vector<1xf32>
      %103 = vector.shape_cast %102 : vector<1xf32> to vector<1x1x1xf32>
      %104 = vector.extract %103[0, 0, 0] : f32 from vector<1x1x1xf32>
      %c0_53 = arith.constant 0 : index
      %c0_54 = arith.constant 0 : index
      %105 = vector.load %arg7[%c0_53, %c0_54] : memref<8x128xf32, #tpu.memory_space<vmem>>, vector<8x128xf32>
      %106 = vector.shape_cast %105 : vector<8x128xf32> to vector<1x8x128xf32>
      %cst_55 = arith.constant dense<0.000000e+00> : vector<1xf32>
      %107 = vector.multi_reduction <add>, %106, %cst_55 [1, 2] : vector<1x8x128xf32> to vector<1xf32>
      %108 = vector.shape_cast %107 : vector<1xf32> to vector<1x1x1xf32>
      %109 = vector.extract %108[0, 0, 0] : f32 from vector<1x1x1xf32>
      %c0_56 = arith.constant 0 : index
      %c0_57 = arith.constant 0 : index
      %110 = vector.load %arg8[%c0_56, %c0_57] : memref<8x128xf32, #tpu.memory_space<vmem>>, vector<8x128xf32>
      %111 = vector.shape_cast %110 : vector<8x128xf32> to vector<1x8x128xf32>
      %cst_58 = arith.constant dense<0.000000e+00> : vector<1xf32>
      %112 = vector.multi_reduction <add>, %111, %cst_58 [1, 2] : vector<1x8x128xf32> to vector<1xf32>
      %113 = vector.shape_cast %112 : vector<1xf32> to vector<1x1x1xf32>
      %114 = vector.extract %113[0, 0, 0] : f32 from vector<1x1x1xf32>
      %115 = tpu.iota {dimensions = array<i32: 1>} : vector<8x128xi32>
      %c0_i32_59 = arith.constant 0 : i32
      %116 = vector.broadcast %c0_i32_59 : i32 to vector<8x128xi32>
      %117 = arith.cmpi eq, %115, %116 : vector<8x128xi32>
      %c1_i32 = arith.constant 1 : i32
      %118 = vector.broadcast %c1_i32 : i32 to vector<8x128xi32>
      %119 = arith.cmpi eq, %115, %118 : vector<8x128xi32>
      %c2_i32 = arith.constant 2 : i32
      %120 = vector.broadcast %c2_i32 : i32 to vector<8x128xi32>
      %121 = arith.cmpi eq, %115, %120 : vector<8x128xi32>
      %cst_60 = arith.constant 0.000000e+00 : f32
      %122 = vector.broadcast %114 : f32 to vector<8x128xf32>
      %123 = vector.broadcast %cst_60 : f32 to vector<8x128xf32>
      %124 = arith.select %121, %122, %123 : vector<8x128xi1>, vector<8x128xf32>
      %125 = vector.broadcast %109 : f32 to vector<8x128xf32>
      %126 = arith.select %119, %125, %124 : vector<8x128xi1>, vector<8x128xf32>
      %127 = vector.broadcast %104 : f32 to vector<8x128xf32>
      %128 = arith.select %117, %127, %126 : vector<8x128xi1>, vector<8x128xf32>
      %c0_61 = arith.constant 0 : index
      %c0_62 = arith.constant 0 : index
      %c0_63 = arith.constant 0 : index
      %c0_64 = arith.constant 0 : index
      %129 = vector.load %arg5[%c0_61, %c0_62, %c0_63, %c0_64] : memref<1x1x8x128xf32, #tpu.memory_space<vmem>>, vector<1x1x8x128xf32>
      %130 = vector.shape_cast %129 : vector<1x1x8x128xf32> to vector<8x128xf32>
      %131 = vector.shape_cast %128 : vector<8x128xf32> to vector<1x1x8x128xf32>
      tpu.vector_store %arg5[%c0_61, %c0_62, %c0_63, %c0_64], %131 {strides = array<i32>} : memref<1x1x8x128xf32, #tpu.memory_space<vmem>>, vector<1x1x8x128xf32>,
    } else {
    }
    return
  }
  func.func @transform_0(%arg0: i32, %arg1: i32, %arg2: i32) -> (i32, i32, i32, i32) {
    %c1_i32 = arith.constant 1 : i32
    %0 = arith.muli %arg1, %c1_i32 : i32
    %1 = arith.addi %0, %arg2 : i32
    %c0_i32 = arith.constant 0 : i32
    %c0_i32_0 = arith.constant 0 : i32
    %c0_i32_1 = arith.constant 0 : i32
    return %arg0, %c0_i32, %1, %c0_i32_0 : i32, i32, i32, i32
  }
  func.func @transform_1(%arg0: i32, %arg1: i32, %arg2: i32) -> (i32, i32, i32, i32) {
    %c1_i32 = arith.constant 1 : i32
    %0 = arith.muli %arg1, %c1_i32 : i32
    %1 = arith.addi %0, %arg2 : i32
    %c0_i32 = arith.constant 0 : i32
    %c0_i32_0 = arith.constant 0 : i32
    %c0_i32_1 = arith.constant 0 : i32
    return %arg0, %c0_i32, %1, %c0_i32_0 : i32, i32, i32, i32
  }
  func.func @transform_2(%arg0: i32, %arg1: i32, %arg2: i32) -> (i32, i32, i32, i32) {
    %c0_i32 = arith.constant 0 : i32
    %c0_i32_0 = arith.constant 0 : i32
    %c0_i32_1 = arith.constant 0 : i32
    return %arg0, %arg1, %c0_i32, %c0_i32_0 : i32, i32, i32, i32
  }
}

</mosaic_0001>

<bundles_post_ra>
// kernel: tpu_custom_call.1
= control target key start
LH: loop header
LB: loop body
LE: loop exit
PB: predicated region body
PF: predicated region fallthrough
CT: control target
= control target key end

     0   :  { %7 = vsyncpa [#allocation6], 0  ;;  %s1052_s0 = inlined_call_operand.hbm [shape: f32[2,4,8,128], index: 0, kind: input, shape index: {}]   ;;  %s1053_s1 = inlined_call_operand.hbm [shape: f32[2,4,8,128], index: 1, kind: input, shape index: {}]   ;;  %s1054_s2 = inlined_call_operand.hbm [shape: f32[2,1,8,128], index: 2, kind: output, shape index: {}]  }
   0x1   :  { %9 = vsyncpa [#allocation6 + $0x1], 0 }
   0x2   :  { %10 = vsyncpa [#allocation9], 0 }
   0x3   :  { %12 = vsyncpa [#allocation9 + $0x1], 0 }
   0x4   :  { %13 = vsyncpa [#allocation7], 0 }
   0x5   :  { %15 = vsyncpa [#allocation7 + $0x1], 0  ;;  %s811_s9 = smov 0   ;;  %s813_s10 = smov 0  }
   0x6   :  { %s815_s11 = smov 0   ;;  %s817_s12 = smov 0  }
   0x7   :  { %s819_s13 = smov 0   ;;  %s821_s14 = smov 0  }
   0x8 LB: > { %s512_s15 = sadd.s32 4294967295, %s789_s14   ;;  %s513_s16 = sadd.s32 4294967294, %s789_s14   ;;  %s789_s14 = sphi %s821_s14, %s21_s14   ;;  %s785_s13 = sphi %s819_s13, %s1072_s13   ;;  %s781_s12 = sphi %s817_s12, %s1071_s12   ;;  %s777_s11 = sphi %s815_s11, %s1070_s11   ;;  %s773_s10 = sphi %s813_s10, %s1069_s10   ;;  %s769_s9 = sphi %s811_s9, %s1068_s9  }
   0x9   : > { %s40_s17 = sadd.s32 1, %s785_s13  ;;  %s51_s18 = sadd.s32 1, %s777_s11 }
   0xa   : > { %p42_p0 = scmp.ge.s32.totalorder %s40_s17, 2  ;;  %p58_p1 = scmp.ne.s32.totalorder %s777_s11, %s773_s10 }
   0xb   : > { %p59_p2 = scmp.eq.s32.totalorder %s789_s14, 0  ;;  %p64_p3 = scmp.ne.s32.totalorder %s773_s10, %s769_s9 }
   0xc   : > { %s1074_s17 = smov (%p42_p0, %s40_s17), 0  ;;  %p65_p5 = scmp.eq.s32.totalorder %s512_s15, 0 }
   0xd   : > { %p852_p4 = por %p59_p2, %p58_p1  ;;  %s46_s20 = ssub.s32 %s785_s13, %s1074_s17 }
   0xe   : > { %p120_p6 = scmp.eq.s32.totalorder %s512_s15, 1  ;;  %p49_p7 = scmp.eq.s32.totalorder %s46_s20, 0 }
   0xf   : > { %p858_p8 = por %p65_p5, %p64_p3  ;;  %p126_p10 = scmp.eq.s32.totalorder %s513_s16, 1 }
  0x10   : > { %p862_p9 = por %p120_p6, %p58_p1  ;;  %p565_p13 = scmp.lt.s32.totalorder %s789_s14, 2 }
  0x11   : > { %s1058_s21 = scalar_select %p858_p8, 1, 0 }
  0x12   : > { %s1059_s22 = scalar_select %p862_p9, 1, 0 }
  0x13   : > { %s867_s23 = scalar_select %p49_p7, %s777_s11, %s51_s18  }
  0x14   : > { %p869_p11 = por %p126_p10, %p64_p3  ;;  %s876_s25 = sand.u32 1, %s777_s11  }
  0x15   : > { %s516_s26 = sshll.u32 %s876_s25, 5  ;;  %s540_s27 = sshll.u32 %s785_s13, 9 }
  0x16   : > { %s1060_s24 = scalar_select %p869_p11, 1, 0 }
  0x17   : > { %s885_s30 = scalar_lea.hbm %s1052_s0, %s540_s27  ;;  %s150_s3 = scalar_lea.vmem [#allocation5], %s516_s26 }
  0x18   : > { %s159_s4 = sshll.u32 %s150_s3, 4  ;;  %p893_p0 = pnand %p565_p13, %p852_p4  ;;  %s889_s4 = int_to_ptr.vmem [resolvable:$true] %s159_s4 }
  0x19   : > { %s147_s6 = scalar_lea.sflag [#allocation6], %s876_s25  ;;  %s643_s7 = scalar_lea.hbm %s885_s30, 512 }
  0x1a   : > { %p644_p2 = scmp.ne.s32.totalorder %s885_s30, %s643_s7  ;;  %p645_p3 = pneg %p893_p0 }
  0x1b   : > { %s648_s16 = scalar_lea.hbm %s1052_s0, 1024  ;;  %p649_p4 = scmp.lt.u32.totalorder %s885_s30, %s1052_s0 }
  0x1c   : > { %p646_p5 = pnand %p645_p3, %p644_p2  ;;  %p650_p7 = scmp.lt.u32.totalorder %s648_s16, %s643_s7 }
  0x1d   : > { %p652_p13 = scmp.lt.u32.totalorder %s643_s7, %s885_s30 }
  0x1e   : > { %p647_p6 = pneg %p646_p5  ;;  %p651_p10 = por %p650_p7, %p649_p4 }
  0x20   : > { %p653_p12 = por %p652_p13, %p651_p10 }
  0x22   : > { %p654_p1 = pnand %p653_p12, %p647_p6 }
  0x24   : > { %657 = shalt.err (!%p654_p1)
}
  0x25   : > { %s658_s20 = scalar_lea.vmem %s889_s4, 512  ;;  %s791_s28 = smov [#allocation5]  }
  0x26   : > { %p659_p2 = scmp.ne.s32.totalorder %s889_s4, %s658_s20  ;;  %s663_s29 = sshll.u32 %s791_s28, 4  ;;  %s664_s29 = int_to_ptr.vmem [resolvable:$false] %s663_s29 }
  0x27   : > { %s665_s3 = scalar_lea.vmem %s664_s29, 1024  ;;  %p666_p9 = scmp.lt.s32.totalorder %s889_s4, %s664_s29 }
  0x28   : > { %p661_p5 = pnand %p659_p2, %p645_p3  ;;  %p667_p4 = scmp.lt.s32.totalorder %s665_s3, %s658_s20 }
  0x2a   : > { %p662_p11 = pneg %p661_p5  ;;  %p668_p7 = por %p667_p4, %p666_p9 }
  0x2c   : > { %p669_p10 = pnand %p668_p7, %p662_p11 }
  0x2e   : > { %672 = shalt.err (!%p669_p10)
}
  0x2f   : > { %s792_s7 = smov 128   ;;  %s793_s8 = smov 8  }
  0x30   : > { %557 = dma.hbm_to_vmem [thread:$0]  (!%p893_p0), %s885_s30, 512, %s889_s4, %s147_s6, %s792_s7, %s792_s7, %s793_s8  }
  0x31   : > { %p190_p9 = scmp.lt.s32.totalorder %s789_s14, 3  ;;  %s935_s18 = scalar_lea.hbm %s1053_s1, %s540_s27 }
  0x32   : > { %p1062_p11 = scmp.ge.s32.totalorder %s789_s14, 1  ;;  %s173_s20 = scalar_lea.vmem [#allocation8], %s516_s26 }
  0x33   : > { %s182_s28 = sshll.u32 %s173_s20, 4  ;;  %s170_s30 = scalar_lea.sflag [#allocation9], %s876_s25  ;;  %s945_s28 = int_to_ptr.vmem [resolvable:$true] %s182_s28 }
  0x34   : > { %p939_p12 = pnand %p1062_p11, %p190_p9  ;;  %s673_s4 = scalar_lea.hbm %s935_s18, 512 }
  0x35   : > { %p674_p1 = scmp.ne.s32.totalorder %s935_s18, %s673_s4  ;;  %s678_s29 = scalar_lea.hbm %s1053_s1, 1024 }
  0x36   : > { %p679_p2 = scmp.lt.u32.totalorder %s935_s18, %s1053_s1  ;;  %p680_p5 = scmp.lt.u32.totalorder %s678_s29, %s673_s4 }
  0x37   : > { %p676_p6 = pnand %p674_p1, %p645_p3  ;;  %p682_p7 = scmp.lt.u32.totalorder %s673_s4, %s935_s18 }
  0x38   : > { %p681_p4 = por %p680_p5, %p679_p2 }
  0x39   : > { %p677_p13 = pneg %p676_p6 }
  0x3a   : > { %p683_p10 = por %p682_p7, %p681_p4 }
  0x3c   : > { %p684_p9 = pnand %p683_p10, %p677_p13 }
  0x3e   : > { %687 = shalt.err (!%p684_p9)
}
  0x3f   : > { %s688_s26 = scalar_lea.vmem %s945_s28, 512  ;;  %s794_s16 = smov [#allocation8]  }
  0x40   : > { %p689_p11 = scmp.ne.s32.totalorder %s945_s28, %s688_s26  ;;  %s693_s20 = sshll.u32 %s794_s16, 4  ;;  %s694_s20 = int_to_ptr.vmem [resolvable:$false] %s693_s20 }
  0x41   : > { %s695_s27 = scalar_lea.vmem %s694_s20, 1024  ;;  %p696_p8 = scmp.lt.s32.totalorder %s945_s28, %s694_s20 }
  0x42   : > { %p691_p1 = pnand %p689_p11, %p645_p3  ;;  %p697_p2 = scmp.lt.s32.totalorder %s695_s27, %s688_s26 }
  0x44   : > { %p692_p6 = pneg %p691_p1  ;;  %p698_p5 = por %p697_p2, %p696_p8 }
  0x46   : > { %p699_p4 = pnand %p698_p5, %p692_p6 }
  0x48   : > { %702 = shalt.err (!%p699_p4)
}
  0x49   : > { %560 = dma.hbm_to_vmem [thread:$0]  (!%p893_p0), %s935_s18, 512, %s945_s28, %s170_s30, %s792_s7, %s792_s7, %s793_s8  }
  0x4a   : > { %194 = sbr.rel (%p939_p12) target bundleno = 351 (0x15f), region = 28  ;;  %s979_s4 = sand.u32 (!%p939_p12), 1, %s773_s10  }
  0x4b   : > { %s523_s6 = sshll.u32 (!%p939_p12), %s979_s4, 5  ;;  %s197_s29 = scalar_lea.sflag (!%p939_p12), [#allocation6], %s979_s4 }
  0x4c   : > { %s200_s5 = scalar_lea.vmem (!%p939_p12), [#allocation5], %s523_s6  ;;  %p1064_p8 = scmp.ne.s32.totalorder (!%p939_p12), %s1058_s21, 0 }
  0x51   : > { %756 = dma.done.wait (%p1064_p8), %s197_s29, 512  }
  0x52   : > { %758 = vsyncadd (%p1064_p8), %s197_s29, 4294966784  ;;  %s206_s25 = scalar_lea.sflag [#allocation9], %s979_s4  ;;  %s988_s7 = scalar_lea.vmem [#allocation8], %s523_s6 }
  0x53   : > { %760 = dma.done.wait (%p1064_p8), %s206_s25, 512  }
  0x54   : > { %762 = vsyncadd (%p1064_p8), %s206_s25, 4294966784  ;;  %v244_v0 = vld [vmem:[%s200_s5] sm:$0xff]  ;;  %v526_v1 = vld [vmem:[%s200_s5 + $0x8] sm:$0xff]  ;;  %s525_s21 = sshll.u32 %s979_s4, 3  ;;  %s537_s19 = sshll.u32 %s781_s12, 7 }
  0x55   : > { %v527_v2 = vld [vmem:[%s200_s5 + $0x10] sm:$0xff]  ;;  %v528_v3 = vld [vmem:[%s200_s5 + $0x18] sm:$0xff]  ;;  %v532_v4 = vmul.f32 -1.442695, %v244_v0  ;;  %v302_v5 = vmax.f32 %v244_v0, %v526_v1  ;;  %v533_v6 = vmul.f32 -1.442695, %v526_v1  ;;  %s1003_s16 = scalar_lea.hbm %s1054_s2, %s537_s19 }
  0x56   : > { %v534_v7 = vmul.f32 -1.442695, %v527_v2  ;;  %v303_v8 = vmax.f32 %v527_v2, %v528_v3  ;;  %v535_v9 = vmul.f32 -1.442695, %v528_v3  ;;  %v251_v30 = vld [vmem:[%s988_s7] sm:$0xff]  ;;  %v529_v31 = vld [vmem:[%s988_s7 + $0x8] sm:$0xff] }
  0x57   : > { %617 = vpow2.f32 %v532_v4  ;;  %v322_v34 = vmul.f32 0.011328939, %v251_v30  ;;  %v323_v35 = vmul.f32 0.46468574, %v529_v31  ;;  %v296_v36 = vadd.f32 %v529_v31, %v251_v30  ;;  %v530_v39 = vld [vmem:[%s988_s7 + $0x10] sm:$0xff]  ;;  %v531_v42 = vld [vmem:[%s988_s7 + $0x18] sm:$0xff] }
  0x58   : > { %619 = vpow2.f32 %v533_v6  ;;  %v304_v10 = vmax.f32 %v302_v5, %v303_v8  ;;  %v324_v44 = vmul.f32 0.13541345, %v530_v39  ;;  %v325_v57 = vmul.f32 0.38857186, %v531_v42  ;;  %s234_s30 = scalar_lea.vmem [#allocation10], %s525_s21  ;;  %s387_s12 = scalar_lea.sflag [#allocation7], %s979_s4 }
  0x59   : > { %621 = vpow2.f32 %v534_v7  ;;  %v297_v50 = vadd.f32 %v530_v39, %v296_v36  ;;  %v327_v53 = vadd.f32 %v323_v35, %v322_v34  ;;  %s401_s3 = sshll.u32 %s234_s30, 4  ;;  %p1065_p3 = scmp.ne.s32.totalorder %s1059_s22, 0  ;;  %s1005_s3 = int_to_ptr.vmem [resolvable:$true] %s401_s3 }
  0x5a   : > { %623 = vpow2.f32 %v535_v9  ;;  %v305_v11 = vsub.f32 %v244_v0, %v304_v10  ;;  %v306_v12 = vsub.f32 %v526_v1, %v304_v10  ;;  %v307_v13 = vsub.f32 %v527_v2, %v304_v10  ;;  %s703_s20 = scalar_lea.vmem %s1005_s3, 128  ;;  %s795_s27 = smov [#allocation10]  }
  0x5b   : > { %v308_v14 = vsub.f32 %v528_v3, %v304_v10  ;;  %v298_v62 = vadd.f32 %v531_v42, %v297_v50  ;;  %v328_v63 = vadd.f32 %v327_v53, %v324_v44  ;;  %p704_p0 = scmp.ne.s32.totalorder %s1005_s3, %s703_s20  ;;  %s707_s6 = sshll.u32 %s795_s27, 4  ;;  %s708_s6 = int_to_ptr.vmem [resolvable:$false] %s707_s6 }
  0x5c   : > { %v309_v15 = vmul.f32 1.442695, %v305_v11  ;;  %v311_v16 = vmul.f32 1.442695, %v306_v12  ;;  %v314_v17 = vmul.f32 1.442695, %v307_v13  ;;  %v331_v45 = vmul.f32 %v322_v34, %v305_v11  ;;  %p710_p7 = scmp.lt.s32.totalorder %s1005_s3, %s708_s6 }
  0x5d   : > { %v317_v18 = vmul.f32 1.442695, %v308_v14  ;;  %v332_v46 = vmul.f32 %v323_v35, %v306_v12  ;;  %v334_v59 = vmul.f32 %v324_v44, %v307_v13  ;;  %v336_v2 = vmul.f32 %v325_v57, %v308_v14  ;;  %p705_p12 = pnand %p704_p0, %p1065_p3  ;;  %s709_s29 = scalar_lea.vmem %s708_s6, 256 }
  0x5e   : > { %625 = vpow2.f32 %v309_v15  ;;  %v329_v4 = vadd.f32 %v328_v63, %v325_v57  ;;  %p711_p10 = scmp.lt.s32.totalorder %s709_s29, %s703_s20 }
  0x5f   : > { %627 = vpow2.f32 %v311_v16  ;;  %v333_v58 = vadd.f32 %v332_v46, %v331_v45  ;;  %p706_p13 = pneg %p705_p12 }
  0x60   : > { %629 = vpow2.f32 %v314_v17  ;;  %p712_p9 = por %p711_p10, %p710_p7 }
  0x61   : > { %v618_v19 = vpop.eup %617  ;;  %631 = vpow2.f32 %v317_v18  ;;  %v335_v1 = vadd.f32 %v334_v59, %v333_v58 }
  0x62   : > { %v620_v20 = vpop.eup %619  ;;  %v261_v21 = vadd.f32 1.0, %v618_v19  ;;  %p713_p11 = pnand %p712_p9, %p706_p13 }
  0x63   : > { %v622_v22 = vpop.eup %621  ;;  %v267_v23 = vadd.f32 1.0, %v620_v20  ;;  %v337_v7 = vadd.f32 %v336_v2, %v335_v1 }
  0x64   : > { %v624_v24 = vpop.eup %623  ;;  %633 = vrcp.f32 %v261_v21  ;;  %v273_v25 = vadd.f32 1.0, %v622_v22 }
  0x65   : > { %635 = vrcp.f32 %v267_v23  ;;  %v279_v26 = vadd.f32 1.0, %v624_v24 }
  0x66   : > { %637 = vrcp.f32 %v273_v25 }
  0x67   : > { %639 = vrcp.f32 %v279_v26 }
  0x68   : > { %v626_v27 = vpop.eup %625 }
  0x69   : > { %v628_v28 = vpop.eup %627 }
  0x6a   : > { %v630_v29 = vpop.eup %629  ;;  %v313_v32 = vadd.f32 %v628_v28, %v626_v27 }
  0x6b   : > { %v632_v33 = vpop.eup %631 }
  0x6c   : > { %v316_v37 = vadd.f32 %v630_v29, %v313_v32 }
  0x6e   : > { %v634_v38 = vpop.eup %633  ;;  %v319_v40 = vadd.f32 %v632_v33, %v316_v37 }
  0x6f   : > { %v636_v41 = vpop.eup %635  ;;  %v283_v43 = vmul.f32 %v634_v38, %v251_v30 }
  0x70   : > { %v638_v47 = vpop.eup %637  ;;  %v284_v48 = vmul.f32 %v636_v41, %v529_v31  ;;  %v293_v49 = vadd.f32 %v636_v41, %v634_v38  ;;  %641 = vlog2.f32 %v319_v40  ;;  %v374_v31 = vlaneseq }
  0x71   : > { %v640_v51 = vpop.eup %639  ;;  %v286_v52 = vmul.f32 %v638_v47, %v530_v39 }
  0x72   : > { %v285_v54 = vadd.f32 %v284_v48, %v283_v43  ;;  %v288_v55 = vmul.f32 %v640_v51, %v531_v42  ;;  %v294_v56 = vadd.f32 %v638_v47, %v293_v49  ;;  %v375_v32 = vand.u32 127, %v374_v31 }
  0x74   : > { %v287_v60 = vadd.f32 %v286_v52, %v285_v54  ;;  %v295_v61 = vadd.f32 %v640_v51, %v294_v56  ;;  %vm378_vm0 = vcmp.eq.s32.totalorder %v375_v32, 2  ;;  %vm377_vm1 = vcmp.eq.s32.totalorder %v375_v32, 1 }
  0x75   : > { %vm376_vm2 = vcmp.eq.s32.totalorder %v375_v32, 0 }
  0x76   : > { %v289_v0 = vadd.f32 %v288_v55, %v287_v60  ;;  %v299_v3 = vadd.f32 %v298_v62, %v295_v61 }
  0x78   : > { %345 = vadd.xlane.f32.xlu0 %v289_v0 }
  0x7a   : > { %v642_v5 = vpop.eup %641 }
  0x7b   : > { %v321_v6 = vmul.f32 0.6931472, %v642_v5 }
  0x7c   : > { %355 = vadd.xlane.f32.xlu0 %v299_v3 }
  0x7d   : > { %v330_v8 = vmul.f32 %v329_v4, %v321_v6 }
  0x7f   : > { %v338_v9 = vsub.f32 %v330_v8, %v337_v7 }
  0x81   : > { %365 = vadd.xlane.f32.xlu1 %v338_v9 }
 0x105   : > { %v346_v10 = vpop.xlane.xlu0 %345 }
 0x106   : > { %v347_v11 = vrot.slane %v346_v10, 4 }
 0x108   : > { %v348_v12 = vadd.f32 %v347_v11, %v346_v10 }
 0x109   : > { %v356_v13 = vpop.xlane.xlu0 %355 }
 0x10a   : > { %v349_v15 = vrot.slane %v348_v12, 2  ;;  %v357_v16 = vrot.slane %v356_v13, 4 }
 0x10c   : > { %v358_v17 = vadd.f32 %v357_v16, %v356_v13  ;;  %v350_v18 = vadd.f32 %v349_v15, %v348_v12 }
 0x10e   : > { %v359_v19 = vrot.slane %v358_v17, 2  ;;  %v366_v14 = vpop.xlane.xlu1 %365  ;;  %v351_v20 = vrot.slane %v350_v18, 1 }
 0x10f   : > { %v367_v21 = vrot.slane %v366_v14, 4 }
 0x110   : > { %v360_v22 = vadd.f32 %v359_v19, %v358_v17  ;;  %v352_v23 = vadd.f32 %v351_v20, %v350_v18 }
 0x111   : > { %v368_v24 = vadd.f32 %v367_v21, %v366_v14 }
 0x112   : > { %542 = vpush %v352_v23  ;;  %v361_v25 = vrot.slane %v360_v22, 1 }
 0x113   : > { %v369_v26 = vrot.slane %v368_v24, 2 }
 0x114   : > { %v362_v27 = vadd.f32 %v361_v25, %v360_v22 }
 0x115   : > { %v370_v28 = vadd.f32 %v369_v26, %v368_v24 }
 0x116   : > { %544 = vpush %v362_v27 }
 0x117   : > { %v371_v29 = vrot.slane %v370_v28, 1 }
 0x119   : > { %v372_v30 = vadd.f32 %v371_v29, %v370_v28 }
 0x11b   : > { %546 = vpush %v372_v30 }
 0x143   : > { %s543_s8 = spop %542 }
 0x144   : > { %v383_v36 = vstv %s543_s8 }
 0x147   : > { %s545_s18 = spop %544 }
 0x148   : > { %v381_v34 = vstv %s545_s18 }
 0x14c   : > { %s547_s28 = spop %546 }
 0x14d   : > { %v379_v33 = vstv %s547_s28 }
 0x14e   : > { %v380_v35 = vsel %vm378_vm0, %v379_v33, 0.0 }
 0x14f   : > { %v382_v37 = vsel %vm377_vm1, %v381_v34, %v380_v35 }
 0x150   : > { %v384_v38 = vsel %vm376_vm2, %v383_v36, %v382_v37 }
 0x151   : > { %385 = vst [vmem:[%s234_s30] sm:$0xff] %v384_v38 }
 0x152   : > { %716 = shalt.err (!%p713_p11)
}
 0x153   : > { %s717_s4 = scalar_lea.hbm %s1003_s16, 128  ;;  %s721_s7 = scalar_lea.hbm %s1054_s2, 256 }
 0x154   : > { %p718_p1 = scmp.ne.s32.totalorder %s1003_s16, %s717_s4  ;;  %p722_p5 = scmp.lt.u32.totalorder %s1003_s16, %s1054_s2 }
 0x155   : > { %p723_p4 = scmp.lt.u32.totalorder %s721_s7, %s717_s4  ;;  %p725_p0 = scmp.lt.u32.totalorder %s717_s4, %s1003_s16 }
 0x156   : > { %p719_p6 = pnand %p718_p1, %p1065_p3 }
 0x157   : > { %p724_p8 = por %p723_p4, %p722_p5 }
 0x158   : > { %p720_p2 = pneg %p719_p6 }
 0x159   : > { %p726_p12 = por %p725_p0, %p724_p8 }
 0x15b   : > { %p727_p13 = pnand %p726_p12, %p720_p2 }
 0x15d   : > { %730 = shalt.err (!%p727_p13)
}
 0x15e   : > { %552 = dma.vmem_to_hbm [thread:$0]  (%p1065_p3), %s1005_s3, 128, %s1003_s16, %s387_s12  }
 0x15f PF: > { %s413_s18 = sand.u32 1, %s769_s9   ;;  %p1066_p7 = scmp.ne.s32.totalorder %s1060_s24, 0 }
 0x160   : > { %p1067_p10 = scmp.ge.s32.totalorder %s789_s14, 2  ;;  %s414_s19 = scalar_lea.sflag [#allocation7], %s413_s18 }
 0x162   : > { %p562_p9 = pnand %p1067_p10, %p1066_p7 }
 0x164   : > { %764 = dma.done.wait (!%p562_p9), %s414_s19, 128  }
 0x165   : > { %766 = vsyncadd (!%p562_p9), %s414_s19, 4294967168  ;;  %s21_s14 = sadd.s32 1, %s789_s14   ;;  %s1068_s9 = smov %s773_s10 }
 0x166   : > { %p18_p11 = scmp.ge.s32.totalorder %s21_s14, 4   ;;  %s1069_s10 = smov %s777_s11 }
 0x167   : > { %s1070_s11 = smov %s867_s23  ;;  %s1071_s12 = smov %s785_s13 }
 0x168   : > { %s1072_s13 = smov %s1074_s17  ;;  %20 = sbr.rel (!%p18_p11) target bundleno = 8 (0x8), region = 100 }
 0x16f   :  { %419 = vsyncpa [#allocation6], 1 }
 0x170   :  { %421 = vsyncpa [#allocation6 + $0x1], 1 }
 0x171   :  { %422 = vsyncpa [#allocation9], 1 }
 0x172   :  { %424 = vsyncpa [#allocation9 + $0x1], 1 }
 0x173   :  { %425 = vsyncpa [#allocation7], 1 }
 0x174   :  { %427 = vsyncpa [#allocation7 + $0x1], 1 }

</bundles_post_ra>
